<compile_context>
chip_gen: v7x
topology: tpu7x:2x2x1
jax: 0.10.0
libtpu: 0.0.40
codegen_flags: <defaults>
</compile_context>

<pallas_src>
import math
import functools

import jax
import jax.numpy as jnp
from jax import lax
from jax.experimental import pallas as pl
from jax.experimental.pallas import tpu as pltpu


_LN_EPS = 1e-5
_INV_SQRT2 = 1.0 / math.sqrt(2.0)


def _transform_kernel(x_ref, w_ref, p_ref, o_ref):
    # x_ref: (tm, H) activations, matmul dtype (bf16 by default).
    # w_ref: (H, H) weight, already transposed so y = x @ w (matmul dtype).
    # p_ref: (3, H) f32 rows = [dense bias, LN gamma, LN beta].
    h = jnp.dot(x_ref[...], w_ref[...], preferred_element_type=jnp.float32)

    p = p_ref[...].astype(jnp.float32)
    bias = p[0:1, :]
    gamma = p[1:2, :]
    beta = p[2:3, :]

    h = h + bias

    # Exact gelu: x * 0.5 * (1 + erf(x / sqrt(2)))  -- f32 epilogue.
    h = h * 0.5 * (1.0 + lax.erf(h * _INV_SQRT2))

    # TF-style LayerNorm over the hidden (lane) axis, fused single pass:
    #   var = E[h^2] - E[h]^2  (biased), normalize with rsqrt (EUP).
    inv_h = 1.0 / h.shape[-1]
    m1 = jnp.sum(h, axis=-1, keepdims=True) * inv_h
    m2 = jnp.sum(h * h, axis=-1, keepdims=True) * inv_h
    var = jnp.maximum(m2 - m1 * m1, 0.0)
    hn = (h - m1) * lax.rsqrt(var + _LN_EPS)

    o_ref[...] = (gamma * hn + beta).astype(o_ref.dtype)


@functools.partial(jax.jit, static_argnames=("tm", "matmul_dtype"))
def bert_prediction_head_transform(x, w_t, bias, gamma, beta, *,
                                   tm=256, matmul_dtype=jnp.bfloat16):
    """x: [T, H] tokens-major. w_t: [H, H] = dense.weight.T; bias/gamma/beta: [H]."""
    T, H = x.shape
    tm = min(tm, T)                    # static (shapes are concrete at trace time)
    n_blocks = pl.cdiv(T, tm)
    T_pad = n_blocks * tm

    x_in = x.astype(matmul_dtype)
    if T_pad != T:
        # Zero-padded rows produce finite garbage (var=0 -> rsqrt(eps)) and are
        # sliced off below; they never alias real outputs.
        x_in = jnp.pad(x_in, ((0, T_pad - T), (0, 0)))
    w_in = w_t.astype(matmul_dtype)
    params = jnp.stack([bias, gamma, beta], axis=0).astype(jnp.float32)  # (3, H)

    out = pl.pallas_call(
        _transform_kernel,
        out_shape=jax.ShapeDtypeStruct((T_pad, H), x.dtype),
        grid_spec=pltpu.PrefetchScalarGridSpec(
            num_scalar_prefetch=0,
            grid=(n_blocks,),
            in_specs=[
                pl.BlockSpec((tm, H), lambda i: (i, 0)),   # activations (tiled)
                pl.BlockSpec((H, H), lambda i: (0, 0)),    # weight (resident)
                pl.BlockSpec((3, H), lambda i: (0, 0)),    # bias/gamma/beta
            ],
            out_specs=pl.BlockSpec((tm, H), lambda i: (i, 0)),
        ),
        compiler_params=pltpu.CompilerParams(
            dimension_semantics=("parallel",)),
    )(x_in, w_in, params)

    return out[:T] if T_pad != T else out


def _reference(x, w_t, bias, gamma, beta):
    h = x.astype(jnp.float32) @ w_t.astype(jnp.float32) + bias
    h = h * 0.5 * (1.0 + lax.erf(h / jnp.sqrt(2.0)))
    u = jnp.mean(h, axis=-1, keepdims=True)
    s = jnp.mean((h - u) ** 2, axis=-1, keepdims=True)
    hn = (h - u) / jnp.sqrt(s + 1e-5)
    return gamma * hn + beta


if __name__ == "__main__":
    key = jax.random.PRNGKey(0)
    k_x, k_w, k_b, k_g, k_be = jax.random.split(key, 5)

    batch, seq, hidden = 2, 8, 32
    x = jax.random.normal(k_x, (batch, seq, hidden), dtype=jnp.float32)

    # Deterministic synthetic parameters (shapes: nn.Linear(H, H) + BertLayerNorm(H)).
    dense_weight = jax.random.normal(k_w, (hidden, hidden), jnp.float32) * 0.02  # (out, in)
    dense_bias = jax.random.normal(k_b, (hidden,), jnp.float32) * 0.01
    ln_weight = 1.0 + 0.1 * jax.random.normal(k_g, (hidden,), jnp.float32)
    ln_bias = 0.1 * jax.random.normal(k_be, (hidden,), jnp.float32)

    x2 = x.reshape(batch * seq, hidden)
    w_t = dense_weight.T  # so y = x @ w_t + b matches PyTorch Linear

    ref = _reference(x2, w_t, dense_bias, ln_weight, ln_bias)

    # Tight check: f32-matmul path matches the exact reference.
    out_f32 = bert_prediction_head_transform(
        x2, w_t, dense_bias, ln_weight, ln_bias, tm=256, matmul_dtype=jnp.float32)
    out_f32 = jax.block_until_ready(out_f32)
    assert jnp.allclose(out_f32, ref, atol=1e-4, rtol=1e-4), "f32 path mismatch"

    # Default fast path: bf16 matmul operands + f32 accumulate (loosened tol).
    out_bf16 = bert_prediction_head_transform(
        x2, w_t, dense_bias, ln_weight, ln_bias, tm=256)
    out_bf16 = jax.block_until_ready(out_bf16)
    assert jnp.allclose(out_bf16, ref, atol=5e-2, rtol=5e-2), "bf16 path mismatch"

    out = out_bf16.reshape(batch, seq, hidden)
    print("KERNEL_OK")
</pallas_src>

<mosaic_0001>
module attributes {stable_mosaic.version = 11 : i64} {
  func.func @_transform_kernel(%arg0: i32, %arg1: memref<16x32xf32, #tpu.memory_space<vmem>>, %arg2: memref<32x32xf32, #tpu.memory_space<vmem>>, %arg3: memref<3x32xf32, #tpu.memory_space<vmem>>, %arg4: memref<16x32xf32, #tpu.memory_space<vmem>>) attributes {dimension_semantics = [#tpu.dimension_semantics<parallel>], iteration_bounds = array<i64: 1>, scalar_prefetch = 0 : i64, scratch_operands = 0 : i64, tpu.core_type = #tpu.core_type<tc>, window_params = [{transform_indices = @transform_0, window_bounds = array<i64: 16, 32>}, {pipeline_mode = #tpu.pipeline_mode<synchronous>, transform_indices = @transform_1, window_bounds = array<i64: 32, 32>}, {pipeline_mode = #tpu.pipeline_mode<synchronous>, transform_indices = @transform_2, window_bounds = array<i64: 3, 32>}, {transform_indices = @transform_3, window_bounds = array<i64: 16, 32>}]} {
    %c0 = arith.constant 0 : index
    %c0_0 = arith.constant 0 : index
    %0 = vector.load %arg1[%c0, %c0_0] : memref<16x32xf32, #tpu.memory_space<vmem>>, vector<16x32xf32>
    %c0_1 = arith.constant 0 : index
    %c0_2 = arith.constant 0 : index
    %1 = vector.load %arg2[%c0_1, %c0_2] : memref<32x32xf32, #tpu.memory_space<vmem>>, vector<32x32xf32>
    %cst = arith.constant dense<0.000000e+00> : vector<16x32xf32>
    %2 = tpu.matmul %0, %1, %cst {dimension_numbers = #tpu.dot_dimension_numbers<[1], [0], [0], [1], [0, 0, 1, 1], [], []>} : vector<16x32xf32>, vector<32x32xf32>, vector<16x32xf32> -> vector<16x32xf32>
    %c0_3 = arith.constant 0 : index
    %c0_4 = arith.constant 0 : index
    %3 = vector.load %arg3[%c0_3, %c0_4] : memref<3x32xf32, #tpu.memory_space<vmem>>, vector<3x32xf32>
    %4 = vector.extract_strided_slice %3 {offsets = [0, 0], sizes = [1, 32], strides = [1, 1]} : vector<3x32xf32> to vector<1x32xf32>
    %5 = vector.extract_strided_slice %3 {offsets = [1, 0], sizes = [1, 32], strides = [1, 1]} : vector<3x32xf32> to vector<1x32xf32>
    %6 = vector.extract_strided_slice %3 {offsets = [2, 0], sizes = [1, 32], strides = [1, 1]} : vector<3x32xf32> to vector<1x32xf32>
    %7 = vector.broadcast %4 : vector<1x32xf32> to vector<16x32xf32>
    %8 = arith.addf %2, %7 : vector<16x32xf32>
    %cst_5 = arith.constant 5.000000e-01 : f32
    %9 = vector.broadcast %cst_5 : f32 to vector<16x32xf32>
    %10 = arith.mulf %8, %9 : vector<16x32xf32>
    %cst_6 = arith.constant 0.707106769 : f32
    %11 = vector.broadcast %cst_6 : f32 to vector<16x32xf32>
    %12 = arith.mulf %8, %11 : vector<16x32xf32>
    %13 = math.erf %12 : vector<16x32xf32>
    %cst_7 = arith.constant 1.000000e+00 : f32
    %14 = vector.broadcast %cst_7 : f32 to vector<16x32xf32>
    %15 = arith.addf %14, %13 : vector<16x32xf32>
    %16 = arith.mulf %10, %15 : vector<16x32xf32>
    %cst_8 = arith.constant dense<0.000000e+00> : vector<16xf32>
    %17 = vector.multi_reduction <add>, %16, %cst_8 [1] : vector<16x32xf32> to vector<16xf32>
    %18 = vector.shape_cast %17 : vector<16xf32> to vector<16x1xf32>
    %cst_9 = arith.constant 3.125000e-02 : f32
    %19 = vector.broadcast %cst_9 : f32 to vector<16x1xf32>
    %20 = arith.mulf %18, %19 : vector<16x1xf32>
    %21 = arith.mulf %16, %16 : vector<16x32xf32>
    %cst_10 = arith.constant dense<0.000000e+00> : vector<16xf32>
    %22 = vector.multi_reduction <add>, %21, %cst_10 [1] : vector<16x32xf32> to vector<16xf32>
    %23 = vector.shape_cast %22 : vector<16xf32> to vector<16x1xf32>
    %cst_11 = arith.constant 3.125000e-02 : f32
    %24 = vector.broadcast %cst_11 : f32 to vector<16x1xf32>
    %25 = arith.mulf %23, %24 : vector<16x1xf32>
    %26 = arith.mulf %20, %20 : vector<16x1xf32>
    %27 = arith.subf %25, %26 : vector<16x1xf32>
    %cst_12 = arith.constant 0.000000e+00 : f32
    %28 = vector.broadcast %cst_12 : f32 to vector<16x1xf32>
    %29 = arith.maximumf %27, %28 : vector<16x1xf32>
    %30 = vector.broadcast %20 : vector<16x1xf32> to vector<16x32xf32>
    %31 = arith.subf %16, %30 : vector<16x32xf32>
    %cst_13 = arith.constant 9.99999974E-6 : f32
    %32 = vector.broadcast %cst_13 : f32 to vector<16x1xf32>
    %33 = arith.addf %29, %32 : vector<16x1xf32>
    %34 = math.rsqrt %33 : vector<16x1xf32>
    %35 = vector.broadcast %34 : vector<16x1xf32> to vector<16x32xf32>
    %36 = arith.mulf %31, %35 : vector<16x32xf32>
    %37 = vector.broadcast %5 : vector<1x32xf32> to vector<16x32xf32>
    %38 = arith.mulf %37, %36 : vector<16x32xf32>
    %39 = vector.broadcast %6 : vector<1x32xf32> to vector<16x32xf32>
    %40 = arith.addf %38, %39 : vector<16x32xf32>
    %c0_14 = arith.constant 0 : index
    %c0_15 = arith.constant 0 : index
    %41 = vector.load %arg4[%c0_14, %c0_15] : memref<16x32xf32, #tpu.memory_space<vmem>>, vector<16x32xf32>
    tpu.vector_store %arg4[%c0_14, %c0_15], %40 {strides = array<i32>} : memref<16x32xf32, #tpu.memory_space<vmem>>, vector<16x32xf32>,
    return
  }
  func.func @transform_0(%arg0: i32) -> (i32, i32) {
    %c0_i32 = arith.constant 0 : i32
    %c0_i32_0 = arith.constant 0 : i32
    return %arg0, %c0_i32 : i32, i32
  }
  func.func @transform_1(%arg0: i32) -> (i32, i32) {
    %c0_i32 = arith.constant 0 : i32
    %c0_i32_0 = arith.constant 0 : i32
    %c0_i32_1 = arith.constant 0 : i32
    return %c0_i32, %c0_i32_0 : i32, i32
  }
  func.func @transform_2(%arg0: i32) -> (i32, i32) {
    %c0_i32 = arith.constant 0 : i32
    %c0_i32_0 = arith.constant 0 : i32
    %c0_i32_1 = arith.constant 0 : i32
    return %c0_i32, %c0_i32_0 : i32, i32
  }
  func.func @transform_3(%arg0: i32) -> (i32, i32) {
    %c0_i32 = arith.constant 0 : i32
    %c0_i32_0 = arith.constant 0 : i32
    return %arg0, %c0_i32 : i32, i32
  }
}

</mosaic_0001>

<bundles_post_ra>
// kernel: bert_prediction_head_transform.1
= control target key start
LH: loop header
LB: loop body
LE: loop exit
PB: predicated region body
PF: predicated region fallthrough
CT: control target
= control target key end

     0   :  { %8 = vsyncpa [#allocation3], 0  ;;  %s353_s0 = inlined_call_operand.vmem [shape: f32[16,32], index: 0, kind: input, shape index: {}]   ;;  %s354_s1 = inlined_call_operand.hbm [shape: f32[32,32], index: 1, kind: input, shape index: {}]   ;;  %s355_s2 = inlined_call_operand.vmem [shape: f32[3,32], index: 2, kind: input, shape index: {}]   ;;  %s356_s3 = inlined_call_operand.hbm [shape: f32[16,32], index: 3, kind: output, shape index: {}]  }
   0x1   :  { %9 = vsyncpa [#allocation4], 0  ;;  %s282_s12 = smov [#allocation2]   ;;  %s234_s16 = scalar_lea.hbm %s354_s1, 512 }
   0x2   :  { %s17_s13 = sshll.u32 %s282_s12, 4  ;;  %p235_p0 = scmp.ne.s32.totalorder %s354_s1, %s234_s16  ;;  %s18_s13 = int_to_ptr.vmem [resolvable:$true] %s17_s13 }
   0x3   :  { %p238_p1 = scmp.lt.u32.totalorder %s234_s16, %s354_s1 }
   0x5   :  { %p240_p2 = pnand %p238_p1, %p235_p0 }
   0x7   :  { %243 = shalt.err (!%p240_p2)
}
   0x8   :  { %s244_s21 = scalar_lea.vmem %s18_s13, 512  ;;  %p249_p4 = scmp.lt.s32.totalorder %s18_s13, %s18_s13 }
   0x9   :  { %p245_p3 = scmp.ne.s32.totalorder %s18_s13, %s244_s21  ;;  %p250_p5 = scmp.lt.s32.totalorder %s244_s21, %s244_s21 }
   0xb   :  { %p251_p6 = por %p250_p5, %p249_p4 }
   0xd   :  { %p252_p7 = pnand %p251_p6, %p245_p3 }
   0xf   :  { %255 = shalt.err (!%p252_p7)
}
  0x10   :  { %s283_s22 = smov 128   ;;  %s284_s23 = smov 8  }
  0x11   :  { %23 = dma.hbm_to_vmem [thread:$0]  %s354_s1, 512, %s18_s13, [#allocation3], %s283_s22, %s283_s22, %s284_s23  }
  0x12   :  { %278 = dma.done.wait [#allocation3], 512  }
  0x13   :  { %279 = vsyncadd [#allocation3], 4294966784  ;;  %vm40_vm0 = vcmask 261120   ;;  %v31_v0 = vld [vmem:[#allocation2] sm:$0xff]  ;;  %v32_v1 = vld [vmem:[#allocation2 + $0x8] sm:$0xff]  ;;  %v36_v8 = vlaneseq }
  0x14   :  { %v33_v2 = vld [vmem:[#allocation2 + $0x10] sm:$0xff]  ;;  %v214_v3 = vpack.c.bf16 %v32_v1, %v31_v0  ;;  %v34_v4 = vld [vmem:[#allocation2 + $0x18] sm:$0xff]  ;;  %v29_v5 = vld [vmem:[%s353_s0] sm:$0xff] }
  0x15   :  { %v218_v6 = vpack.c.bf16 %v34_v4, %v33_v2  ;;  %211 = vmatprep.mubr.msk.f32.mxu0 %vm40_vm0, %v29_v5  ;;  %v30_v7 = vld [vmem:[%s353_s0 + $0x8] sm:$0xff]  ;;  %v37_v9 = vshrl.u32 %v36_v8, 7  ;;  %v35_v11 = vld [vmem:[%s355_s2] sm:$0x7]  ;;  %s285_s0 = smov [#allocation5]  }
  0x16   :  { %215 = vmatprep.subr.bf16.mxu0 %v214_v3  ;;  %s183_s2 = sshll.u32 %s285_s0, 4  ;;  %s184_s2 = int_to_ptr.vmem [resolvable:$true] %s183_s2 }
  0x17   :  { %217 = vmatpush3.bf16.msra.mxu0 %v214_v3  ;;  %v38_v10 = vsub.s32 0, %v37_v9  ;;  %v166_v49 = vsub.s32 1, %v37_v9  ;;  %v172_v50 = vsub.s32 2, %v37_v9  ;;  %s256_s4 = scalar_lea.vmem %s184_s2, 256  ;;  %p261_p9 = scmp.lt.s32.totalorder %s184_s2, %s184_s2 }
  0x18   :  { %219 = vmatprep.subr.bf16.mxu0 %v218_v6  ;;  %p257_p8 = scmp.ne.s32.totalorder %s184_s2, %s256_s4  ;;  %p262_p10 = scmp.lt.s32.totalorder %s256_s4, %s256_s4 }
  0x19   :  { %v39_v12 = vrot.slane %v35_v11, %v38_v10  ;;  %v167_v51 = vrot.slane %v35_v11, %v166_v49  ;;  %v173_v54 = vrot.slane %v35_v11, %v172_v50 }
  0x1a   :  { %p263_p11 = por %p262_p10, %p261_p9 }
  0x1b   :  { %221 = vmatpush3.bf16.msra.mxu0 %v218_v6 }
  0x1c   :  { %p264_p12 = pnand %p263_p11, %p257_p8 }
  0x1e   :  { %212 = vmatmul.mubr.msk.f32.vlgmr.msra.gmra.mrb[0].mxu0 %vm40_vm0, %v30_v7 }
  0xf1   :  { %v213_v13 = vpop.f32.mrb[0].mxu0 }
  0xf2   :  { %v119_v14 = vadd.f32 %v213_v13, %v39_v12  ;;  %v113_v15 = vpop.f32.mrb[1].mxu0 }
  0xf3   :  { %v114_v16 = vadd.f32 %v113_v15, %v39_v12 }
  0xf4   :  { %v125_v17 = vmul.f32 0.70710677, %v119_v14  ;;  %v123_v22 = vmul.f32 0.5, %v119_v14 }
  0xf5   :  { %v124_v18 = vmul.f32 0.70710677, %v114_v16  ;;  %v122_v23 = vmul.f32 0.5, %v114_v16 }
  0xf6   :  { %226 = verf.f32 %v125_v17 }
  0xf7   :  { %228 = verf.f32 %v124_v18 }
 0x100   :  { %v227_v19 = vpop.eup %226 }
 0x101   :  { %v229_v20 = vpop.eup %228  ;;  %v129_v21 = vadd.f32 1.0, %v227_v19 }
 0x102   :  { %v128_v24 = vadd.f32 1.0, %v229_v20 }
 0x103   :  { %v131_v25 = vmul.f32 %v129_v21, %v123_v22 }
 0x104   :  { %v130_v26 = vmul.f32 %v128_v24, %v122_v23 }
 0x105   :  { %v141_v30 = vmul.f32 %v131_v25, %v131_v25  ;;  %v135_v31 = vsel %vm40_vm0, %v131_v25, 0.0 }
 0x106   :  { %v132_v27 = vsel %vm40_vm0, %v130_v26, 0.0  ;;  %v140_v28 = vmul.f32 %v130_v26, %v130_v26 }
 0x107   :  { %133 = vadd.xlane.f32.xlu0 %v132_v27  ;;  %v145_v32 = vsel %vm40_vm0, %v141_v30, 0.0 }
 0x108   :  { %v142_v29 = vsel %vm40_vm0, %v140_v28, 0.0 }
 0x109   :  { %143 = vadd.xlane.f32.xlu1 %v142_v29 }
 0x10b   :  { %136 = vadd.xlane.f32.xlu0 %v135_v31 }
 0x10d   :  { %146 = vadd.xlane.f32.xlu1 %v145_v32 }
 0x194   :  { %v134_v33 = vpop.xlane.xlu0 %133 }
 0x195   :  { %v138_v34 = vmul.f32 0.03125, %v134_v33 }
 0x196   :  { %v144_v35 = vpop.xlane.xlu1 %143 }
 0x197   :  { %v150_v36 = vmul.f32 %v138_v34, %v138_v34  ;;  %v148_v37 = vmul.f32 0.03125, %v144_v35  ;;  %v156_v52 = vsub.f32 %v130_v26, %v138_v34 }
 0x198   :  { %v137_v38 = vpop.xlane.xlu0 %136 }
 0x199   :  { %v152_v39 = vsub.f32 %v148_v37, %v150_v36  ;;  %v139_v40 = vmul.f32 0.03125, %v137_v38 }
 0x19a   :  { %v147_v41 = vpop.xlane.xlu1 %146 }
 0x19b   :  { %v154_v42 = vmax.f32 %v152_v39, 0.0  ;;  %v151_v43 = vmul.f32 %v139_v40, %v139_v40  ;;  %v149_v44 = vmul.f32 0.03125, %v147_v41  ;;  %v157_v56 = vsub.f32 %v131_v25, %v139_v40 }
 0x19d   :  { %v158_v45 = vadd.f32 1e-05, %v154_v42  ;;  %v153_v46 = vsub.f32 %v149_v44, %v151_v43 }
 0x19f   :  { %230 = vrsqrt.f32 %v158_v45  ;;  %v155_v47 = vmax.f32 %v153_v46, 0.0 }
 0x1a1   :  { %v159_v48 = vadd.f32 1e-05, %v155_v47 }
 0x1a3   :  { %232 = vrsqrt.f32 %v159_v48 }
 0x1a9   :  { %v231_v53 = vpop.eup %230 }
 0x1aa   :  { %v162_v55 = vmul.f32 %v231_v53, %v156_v52 }
 0x1ac   :  { %v168_v57 = vmul.f32 %v167_v51, %v162_v55 }
 0x1ad   :  { %v233_v58 = vpop.eup %232 }
 0x1ae   :  { %v163_v59 = vmul.f32 %v233_v58, %v157_v56  ;;  %v174_v60 = vadd.f32 %v173_v54, %v168_v57 }
 0x1b0   :  { %v169_v61 = vmul.f32 %v167_v51, %v163_v59  ;;  %176 = vst.msk [vmem:[#allocation5] sm:$0xff] %vm40_vm0, %v174_v60 }
 0x1b2   :  { %v175_v62 = vadd.f32 %v173_v54, %v169_v61 }
 0x1b4   :  { %177 = vst.msk [vmem:[#allocation5 + $0x8] sm:$0xff] %vm40_vm0, %v175_v62 }
 0x1b5   :  { %267 = shalt.err (!%p264_p12)
}
 0x1b6   :  { %s268_s7 = scalar_lea.hbm %s356_s3, 256 }
 0x1b7   :  { %p269_p13 = scmp.ne.s32.totalorder %s356_s3, %s268_s7  ;;  %p272_p0 = scmp.lt.u32.totalorder %s268_s7, %s356_s3 }
 0x1b9   :  { %p274_p1 = pnand %p272_p0, %p269_p13 }
 0x1bb   :  { %277 = shalt.err (!%p274_p1)
}
 0x1bc   :  { %189 = dma.vmem_to_hbm [thread:$0]  %s184_s2, 256, %s356_s3, [#allocation4], %s283_s22, %s283_s22, %s284_s23  }
 0x1bd   :  { %280 = dma.done.wait [#allocation4], 256  }
 0x1be   :  { %281 = vsyncadd [#allocation4], 4294967040 }
 0x1bf   :  { %193 = vsyncpa [#allocation3], 1 }
 0x1c0   :  { %194 = vsyncpa [#allocation4], 1 }

</bundles_post_ra>
